<compile_context>
chip_gen: v5e
topology: v5e:2x2
jax: 0.10.0
libtpu: 0.0.40
codegen_flags: <defaults>
</compile_context>

<pallas_src>
import jax
import jax.numpy as jnp
from jax import lax
from jax.experimental import pallas as pl
from jax.experimental.pallas import tpu as pltpu


def _round_up(x, m):
    return (x + m - 1) // m * m


def _make_kernel(TH, Wo, C, NP):
    def kernel(x_ref, w_ref, b_ref, o_ref):
        # x_ref: (2, TH+1, 2, Wo+1, C)  laid out as (h-parity, h, w-parity, w, Cin)
        #        padded pixel (h, w) = (2*r + hp, 2*c + wp)
        # w_ref: (3, 3, C, NP)   b_ref: (1, NP) f32   o_ref: (TH*Wo, NP)
        acc = jnp.zeros((TH * Wo, NP), jnp.float32)
        for kh in range(3):
            hp, ho = kh % 2, kh // 2
            for kw in range(3):
                wp, wo = kw % 2, kw // 2
                # Tap (kh, kw) for every output pixel of this tile: unit-stride slices.
                tap = x_ref[hp, pl.ds(ho, TH), wp, pl.ds(wo, Wo), :]   # (TH, Wo, C)
                tap = tap.reshape(TH * Wo, C)
                acc = acc + jnp.dot(tap, w_ref[kh, kw],
                                    preferred_element_type=jnp.float32)
        o_ref[...] = (acc + b_ref[...]).astype(o_ref.dtype)
    return kernel


def downsample(x_nchw, weight, bias, *, tile_h=None, compute_dtype=jnp.float32):
    """Forward pass of Downsample.

    x_nchw: (B, C, H, W);  weight: (C, C, 3, 3) PyTorch OIHW;  bias: (C,)
    returns (B, C, Ho, Wo) with Ho = (H+1-3)//2 + 1, Wo likewise.
    """
    B, C, H, W = x_nchw.shape
    assert weight.shape == (C, C, 3, 3) and bias.shape == (C,)

    Hp, Wp = H + 1, W + 1                       # after F.pad(x, (0,1,0,1))
    Ho = (Hp - 3) // 2 + 1
    Wo = (Wp - 3) // 2 + 1
    NP = _round_up(C, 128)                      # lane-dense output channels

    in_bytes = jnp.dtype(compute_dtype).itemsize
    out_bytes = jnp.dtype(x_nchw.dtype).itemsize

    # ---- output-row tile TH: target ~1024 output pixels / step, bounded by VMEM.
    if tile_h is None:
        tile_h = max(1, pl.cdiv(1024, max(Wo, 1)))
    TH = max(1, min(tile_h, Ho))

    def _vmem_est(th):
        x_blk = 2 * (th + 1) * 2 * (Wo + 1) * C * in_bytes
        w_b = 9 * C * NP * in_bytes
        o_blk = th * Wo * NP * out_bytes
        work = th * Wo * NP * 4 * 3 + th * Wo * C * 4 * 2     # f32 acc + tap temps
        return 2 * (x_blk + w_b + 4096) + 2 * o_blk + work    # double-buffered in/out

    VMEM_BUDGET = 28 * 1024 * 1024              # headroom even on v7x (64 MiB / TC)
    while TH > 1 and _vmem_est(TH) > VMEM_BUDGET:
        TH = max(1, TH // 2)

    Ho_pad = _round_up(Ho, TH)
    nT = Ho_pad // TH

    # ---- pad + parity split in NCHW, halo-gather row tiles, ONE transpose to the
    #      kernel layout (B*nT, h-parity, TH+1, w-parity, Wo+1, C).
    Hpp = 2 * (Ho_pad + 1)
    Wpp = 2 * (Wo + 1)
    xp = jnp.pad(x_nchw, ((0, 0), (0, 0), (0, Hpp - H), (0, Wpp - W)))
    xp = xp.reshape(B, C, Ho_pad + 1, 2, Wo + 1, 2)             # h = 2r+hp, w = 2c+wp
    if nT == 1:
        xp = xp[:, :, None]                                     # (B,C,1,TH+1,2,Wo+1,2)
    else:
        r_idx = jnp.arange(nT)[:, None] * TH + jnp.arange(TH + 1)[None, :]
        xp = xp[:, :, r_idx]                                    # (B,C,nT,TH+1,2,Wo+1,2)
    xp = jnp.transpose(xp, (0, 2, 4, 3, 6, 5, 1))               # (B,nT,2,TH+1,2,Wo+1,C)
    x = xp.reshape(B * nT, 2, TH + 1, 2, Wo + 1, C).astype(compute_dtype)

    # ---- weights (co,ci,kh,kw) -> (kh,kw,ci,co), pad co -> NP; bias as f32 row.
    w = jnp.transpose(weight, (2, 3, 1, 0))
    w = jnp.pad(w, ((0, 0), (0, 0), (0, 0), (0, NP - C))).astype(compute_dtype)
    b = jnp.pad(bias, (0, NP - C)).reshape(1, NP).astype(jnp.float32)

    kernel = _make_kernel(TH, Wo, C, NP)
    M = TH * Wo
    flops = 2 * (B * nT) * M * (9 * C) * NP
    bytes_accessed = (x.size * in_bytes + w.size * in_bytes + b.size * 4
                      + (B * nT) * M * NP * out_bytes)
    vmem_limit = int(min(48 * 1024 * 1024, max(_vmem_est(TH) + (8 << 20), 16 << 20)))

    out = pl.pallas_call(
        kernel,
        out_shape=jax.ShapeDtypeStruct((B * nT, M, NP), x_nchw.dtype),
        grid=(B * nT,),
        in_specs=[
            pl.BlockSpec((None, 2, TH + 1, 2, Wo + 1, C),
                         lambda i: (i, 0, 0, 0, 0, 0)),
            pl.BlockSpec((3, 3, C, NP), lambda i: (0, 0, 0, 0)),   # resident weights
            pl.BlockSpec((1, NP), lambda i: (0, 0)),               # resident bias
        ],
        out_specs=pl.BlockSpec((None, M, NP), lambda i: (i, 0, 0)),
        compiler_params=pltpu.CompilerParams(
            dimension_semantics=("parallel",),   # independent tiles -> 2 TCs on v7x
            vmem_limit_bytes=vmem_limit),
        cost_estimate=pl.CostEstimate(flops=int(flops), transcendentals=0,
                                      bytes_accessed=int(bytes_accessed)),
    )(x, w, b)

    out = out.reshape(B, nT, TH, Wo, NP)[..., :C]               # drop channel padding
    out = out.reshape(B, Ho_pad, Wo, C)[:, :Ho]                 # drop row padding
    # TODO(synk): the final NHWC->NCHW transpose is still an XLA pass; fold it away
    # if the surrounding model can consume NHWC directly.
    return jnp.transpose(out, (0, 3, 1, 2))                     # back to NCHW


def _reference(x_nchw, weight, bias):
    xp = jnp.pad(x_nchw, ((0, 0), (0, 0), (0, 1), (0, 1)))
    y = lax.conv_general_dilated(
        xp, weight, window_strides=(2, 2), padding="VALID",
        dimension_numbers=("NCHW", "OIHW", "NCHW"))
    return y + bias.reshape(1, -1, 1, 1)


if __name__ == "__main__":
    key = jax.random.PRNGKey(0)
    kx, kw, kb, kx2, kw2, kb2 = jax.random.split(key, 6)

    # --- main test: B=2, C=4, 16x16 -> 8x8 ---------------------------------------
    B, C, H, W = 2, 4, 16, 16
    x = jax.random.normal(kx, (B, C, H, W), dtype=jnp.float32)
    fan_in = C * 3 * 3
    bound = 1.0 / (fan_in ** 0.5)
    weight = jax.random.uniform(kw, (C, C, 3, 3), jnp.float32, -bound, bound)
    bias = jax.random.uniform(kb, (C,), jnp.float32, -bound, bound)

    y = jax.jit(lambda a, w_, b_: downsample(a, w_, b_))(x, weight, bias)
    jax.block_until_ready(y)
    y_ref = _reference(x, weight, bias)
    assert y.shape == (B, C, 8, 8), y.shape
    assert jnp.allclose(y, y_ref, atol=1e-4, rtol=1e-4)

    # --- bf16 MXU inputs, f32 accumulation (loose tolerance for bf16 rounding) ----
    y_bf16 = jax.jit(lambda a, w_, b_: downsample(
        a, w_, b_, compute_dtype=jnp.bfloat16))(x, weight, bias)
    jax.block_until_ready(y_bf16)
    assert jnp.allclose(y_bf16, y_ref, atol=2e-1, rtol=2e-1)

    # --- odd spatial dims + multiple row tiles (exercises halo gather path) -------
    B2, C2, H2, W2 = 1, 8, 15, 15
    x2 = jax.random.normal(kx2, (B2, C2, H2, W2), dtype=jnp.float32)
    fan_in2 = C2 * 3 * 3
    bound2 = 1.0 / (fan_in2 ** 0.5)
    weight2 = jax.random.uniform(kw2, (C2, C2, 3, 3), jnp.float32, -bound2, bound2)
    bias2 = jax.random.uniform(kb2, (C2,), jnp.float32, -bound2, bound2)

    y2 = jax.jit(lambda a, w_, b_: downsample(a, w_, b_, tile_h=3))(x2, weight2, bias2)
    jax.block_until_ready(y2)
    y2_ref = _reference(x2, weight2, bias2)
    assert y2.shape == (B2, C2, 7, 7), y2.shape
    assert jnp.allclose(y2, y2_ref, atol=1e-4, rtol=1e-4)

    print("KERNEL_OK")
</pallas_src>

<mosaic_0001>
module attributes {stable_mosaic.version = 11 : i64} {
  func.func @kernel(%arg0: i32, %arg1: memref<1x2x9x2x9x4xf32, #tpu.memory_space<vmem>>, %arg2: memref<3x3x4x128xf32, #tpu.memory_space<vmem>>, %arg3: memref<1x128xf32, #tpu.memory_space<vmem>>, %arg4: memref<1x64x128xf32, #tpu.memory_space<vmem>>) attributes {dimension_semantics = [#tpu.dimension_semantics<parallel>], iteration_bounds = array<i64: 2>, scalar_prefetch = 0 : i64, scratch_operands = 0 : i64, tpu.core_type = #tpu.core_type<tc>, window_params = [{transform_indices = @transform_0, window_bounds = array<i64: 1, 2, 9, 2, 9, 4>}, {pipeline_mode = #tpu.pipeline_mode<synchronous>, transform_indices = @transform_1, window_bounds = array<i64: 3, 3, 4, 128>}, {pipeline_mode = #tpu.pipeline_mode<synchronous>, transform_indices = @transform_2, window_bounds = array<i64: 1, 128>}, {transform_indices = @transform_3, window_bounds = array<i64: 1, 64, 128>}]} {
    %cst = arith.constant 0.000000e+00 : f32
    %0 = vector.broadcast %cst : f32 to vector<64x128xf32>
    %c0 = arith.constant 0 : index
    %c0_0 = arith.constant 0 : index
    %c0_1 = arith.constant 0 : index
    %c0_2 = arith.constant 0 : index
    %c0_3 = arith.constant 0 : index
    %c0_4 = arith.constant 0 : index
    %1 = vector.load %arg1[%c0, %c0_0, %c0_1, %c0_2, %c0_3, %c0_4] : memref<1x2x9x2x9x4xf32, #tpu.memory_space<vmem>>, vector<1x1x8x1x8x4xf32>
    %2 = vector.shape_cast %1 : vector<1x1x8x1x8x4xf32> to vector<8x8x4xf32>
    %3 = vector.shape_cast %2 : vector<8x8x4xf32> to vector<64x4xf32>
    %c0_5 = arith.constant 0 : index
    %c0_6 = arith.constant 0 : index
    %c0_7 = arith.constant 0 : index
    %c0_8 = arith.constant 0 : index
    %4 = vector.load %arg2[%c0_5, %c0_6, %c0_7, %c0_8] : memref<3x3x4x128xf32, #tpu.memory_space<vmem>>, vector<1x1x4x128xf32>
    %5 = vector.shape_cast %4 : vector<1x1x4x128xf32> to vector<4x128xf32>
    %cst_9 = arith.constant dense<0.000000e+00> : vector<64x128xf32>
    %6 = tpu.matmul %3, %5, %cst_9 {dimension_numbers = #tpu.dot_dimension_numbers<[1], [0], [0], [1], [0, 0, 1, 1], [], []>} : vector<64x4xf32>, vector<4x128xf32>, vector<64x128xf32> -> vector<64x128xf32>
    %7 = arith.addf %0, %6 : vector<64x128xf32>
    %c0_10 = arith.constant 0 : index
    %c0_11 = arith.constant 0 : index
    %c0_12 = arith.constant 0 : index
    %c1 = arith.constant 1 : index
    %c0_13 = arith.constant 0 : index
    %c0_14 = arith.constant 0 : index
    %8 = vector.load %arg1[%c0_10, %c0_11, %c0_12, %c1, %c0_13, %c0_14] : memref<1x2x9x2x9x4xf32, #tpu.memory_space<vmem>>, vector<1x1x8x1x8x4xf32>
    %9 = vector.shape_cast %8 : vector<1x1x8x1x8x4xf32> to vector<8x8x4xf32>
    %10 = vector.shape_cast %9 : vector<8x8x4xf32> to vector<64x4xf32>
    %c0_15 = arith.constant 0 : index
    %c1_16 = arith.constant 1 : index
    %c0_17 = arith.constant 0 : index
    %c0_18 = arith.constant 0 : index
    %11 = vector.load %arg2[%c0_15, %c1_16, %c0_17, %c0_18] : memref<3x3x4x128xf32, #tpu.memory_space<vmem>>, vector<1x1x4x128xf32>
    %12 = vector.shape_cast %11 : vector<1x1x4x128xf32> to vector<4x128xf32>
    %cst_19 = arith.constant dense<0.000000e+00> : vector<64x128xf32>
    %13 = tpu.matmul %10, %12, %cst_19 {dimension_numbers = #tpu.dot_dimension_numbers<[1], [0], [0], [1], [0, 0, 1, 1], [], []>} : vector<64x4xf32>, vector<4x128xf32>, vector<64x128xf32> -> vector<64x128xf32>
    %14 = arith.addf %7, %13 : vector<64x128xf32>
    %c0_20 = arith.constant 0 : index
    %c0_21 = arith.constant 0 : index
    %c0_22 = arith.constant 0 : index
    %c0_23 = arith.constant 0 : index
    %c1_24 = arith.constant 1 : index
    %c0_25 = arith.constant 0 : index
    %15 = vector.load %arg1[%c0_20, %c0_21, %c0_22, %c0_23, %c1_24, %c0_25] : memref<1x2x9x2x9x4xf32, #tpu.memory_space<vmem>>, vector<1x1x8x1x8x4xf32>
    %16 = vector.shape_cast %15 : vector<1x1x8x1x8x4xf32> to vector<8x8x4xf32>
    %17 = vector.shape_cast %16 : vector<8x8x4xf32> to vector<64x4xf32>
    %c0_26 = arith.constant 0 : index
    %c2 = arith.constant 2 : index
    %c0_27 = arith.constant 0 : index
    %c0_28 = arith.constant 0 : index
    %18 = vector.load %arg2[%c0_26, %c2, %c0_27, %c0_28] : memref<3x3x4x128xf32, #tpu.memory_space<vmem>>, vector<1x1x4x128xf32>
    %19 = vector.shape_cast %18 : vector<1x1x4x128xf32> to vector<4x128xf32>
    %cst_29 = arith.constant dense<0.000000e+00> : vector<64x128xf32>
    %20 = tpu.matmul %17, %19, %cst_29 {dimension_numbers = #tpu.dot_dimension_numbers<[1], [0], [0], [1], [0, 0, 1, 1], [], []>} : vector<64x4xf32>, vector<4x128xf32>, vector<64x128xf32> -> vector<64x128xf32>
    %21 = arith.addf %14, %20 : vector<64x128xf32>
    %c0_30 = arith.constant 0 : index
    %c1_31 = arith.constant 1 : index
    %c0_32 = arith.constant 0 : index
    %c0_33 = arith.constant 0 : index
    %c0_34 = arith.constant 0 : index
    %c0_35 = arith.constant 0 : index
    %22 = vector.load %arg1[%c0_30, %c1_31, %c0_32, %c0_33, %c0_34, %c0_35] : memref<1x2x9x2x9x4xf32, #tpu.memory_space<vmem>>, vector<1x1x8x1x8x4xf32>
    %23 = vector.shape_cast %22 : vector<1x1x8x1x8x4xf32> to vector<8x8x4xf32>
    %24 = vector.shape_cast %23 : vector<8x8x4xf32> to vector<64x4xf32>
    %c1_36 = arith.constant 1 : index
    %c0_37 = arith.constant 0 : index
    %c0_38 = arith.constant 0 : index
    %c0_39 = arith.constant 0 : index
    %25 = vector.load %arg2[%c1_36, %c0_37, %c0_38, %c0_39] : memref<3x3x4x128xf32, #tpu.memory_space<vmem>>, vector<1x1x4x128xf32>
    %26 = vector.shape_cast %25 : vector<1x1x4x128xf32> to vector<4x128xf32>
    %cst_40 = arith.constant dense<0.000000e+00> : vector<64x128xf32>
    %27 = tpu.matmul %24, %26, %cst_40 {dimension_numbers = #tpu.dot_dimension_numbers<[1], [0], [0], [1], [0, 0, 1, 1], [], []>} : vector<64x4xf32>, vector<4x128xf32>, vector<64x128xf32> -> vector<64x128xf32>
    %28 = arith.addf %21, %27 : vector<64x128xf32>
    %c0_41 = arith.constant 0 : index
    %c1_42 = arith.constant 1 : index
    %c0_43 = arith.constant 0 : index
    %c1_44 = arith.constant 1 : index
    %c0_45 = arith.constant 0 : index
    %c0_46 = arith.constant 0 : index
    %29 = vector.load %arg1[%c0_41, %c1_42, %c0_43, %c1_44, %c0_45, %c0_46] : memref<1x2x9x2x9x4xf32, #tpu.memory_space<vmem>>, vector<1x1x8x1x8x4xf32>
    %30 = vector.shape_cast %29 : vector<1x1x8x1x8x4xf32> to vector<8x8x4xf32>
    %31 = vector.shape_cast %30 : vector<8x8x4xf32> to vector<64x4xf32>
    %c1_47 = arith.constant 1 : index
    %c1_48 = arith.constant 1 : index
    %c0_49 = arith.constant 0 : index
    %c0_50 = arith.constant 0 : index
    %32 = vector.load %arg2[%c1_47, %c1_48, %c0_49, %c0_50] : memref<3x3x4x128xf32, #tpu.memory_space<vmem>>, vector<1x1x4x128xf32>
    %33 = vector.shape_cast %32 : vector<1x1x4x128xf32> to vector<4x128xf32>
    %cst_51 = arith.constant dense<0.000000e+00> : vector<64x128xf32>
    %34 = tpu.matmul %31, %33, %cst_51 {dimension_numbers = #tpu.dot_dimension_numbers<[1], [0], [0], [1], [0, 0, 1, 1], [], []>} : vector<64x4xf32>, vector<4x128xf32>, vector<64x128xf32> -> vector<64x128xf32>
    %35 = arith.addf %28, %34 : vector<64x128xf32>
    %c0_52 = arith.constant 0 : index
    %c1_53 = arith.constant 1 : index
    %c0_54 = arith.constant 0 : index
    %c0_55 = arith.constant 0 : index
    %c1_56 = arith.constant 1 : index
    %c0_57 = arith.constant 0 : index
    %36 = vector.load %arg1[%c0_52, %c1_53, %c0_54, %c0_55, %c1_56, %c0_57] : memref<1x2x9x2x9x4xf32, #tpu.memory_space<vmem>>, vector<1x1x8x1x8x4xf32>
    %37 = vector.shape_cast %36 : vector<1x1x8x1x8x4xf32> to vector<8x8x4xf32>
    %38 = vector.shape_cast %37 : vector<8x8x4xf32> to vector<64x4xf32>
    %c1_58 = arith.constant 1 : index
    %c2_59 = arith.constant 2 : index
    %c0_60 = arith.constant 0 : index
    %c0_61 = arith.constant 0 : index
    %39 = vector.load %arg2[%c1_58, %c2_59, %c0_60, %c0_61] : memref<3x3x4x128xf32, #tpu.memory_space<vmem>>, vector<1x1x4x128xf32>
    %40 = vector.shape_cast %39 : vector<1x1x4x128xf32> to vector<4x128xf32>
    %cst_62 = arith.constant dense<0.000000e+00> : vector<64x128xf32>
    %41 = tpu.matmul %38, %40, %cst_62 {dimension_numbers = #tpu.dot_dimension_numbers<[1], [0], [0], [1], [0, 0, 1, 1], [], []>} : vector<64x4xf32>, vector<4x128xf32>, vector<64x128xf32> -> vector<64x128xf32>
    %42 = arith.addf %35, %41 : vector<64x128xf32>
    %c0_63 = arith.constant 0 : index
    %c0_64 = arith.constant 0 : index
    %c1_65 = arith.constant 1 : index
    %c0_66 = arith.constant 0 : index
    %c0_67 = arith.constant 0 : index
    %c0_68 = arith.constant 0 : index
    %43 = vector.load %arg1[%c0_63, %c0_64, %c1_65, %c0_66, %c0_67, %c0_68] : memref<1x2x9x2x9x4xf32, #tpu.memory_space<vmem>>, vector<1x1x8x1x8x4xf32>
    %44 = vector.shape_cast %43 : vector<1x1x8x1x8x4xf32> to vector<8x8x4xf32>
    %45 = vector.shape_cast %44 : vector<8x8x4xf32> to vector<64x4xf32>
    %c2_69 = arith.constant 2 : index
    %c0_70 = arith.constant 0 : index
    %c0_71 = arith.constant 0 : index
    %c0_72 = arith.constant 0 : index
    %46 = vector.load %arg2[%c2_69, %c0_70, %c0_71, %c0_72] : memref<3x3x4x128xf32, #tpu.memory_space<vmem>>, vector<1x1x4x128xf32>
    %47 = vector.shape_cast %46 : vector<1x1x4x128xf32> to vector<4x128xf32>
    %cst_73 = arith.constant dense<0.000000e+00> : vector<64x128xf32>
    %48 = tpu.matmul %45, %47, %cst_73 {dimension_numbers = #tpu.dot_dimension_numbers<[1], [0], [0], [1], [0, 0, 1, 1], [], []>} : vector<64x4xf32>, vector<4x128xf32>, vector<64x128xf32> -> vector<64x128xf32>
    %49 = arith.addf %42, %48 : vector<64x128xf32>
    %c0_74 = arith.constant 0 : index
    %c0_75 = arith.constant 0 : index
    %c1_76 = arith.constant 1 : index
    %c1_77 = arith.constant 1 : index
    %c0_78 = arith.constant 0 : index
    %c0_79 = arith.constant 0 : index
    %50 = vector.load %arg1[%c0_74, %c0_75, %c1_76, %c1_77, %c0_78, %c0_79] : memref<1x2x9x2x9x4xf32, #tpu.memory_space<vmem>>, vector<1x1x8x1x8x4xf32>
    %51 = vector.shape_cast %50 : vector<1x1x8x1x8x4xf32> to vector<8x8x4xf32>
    %52 = vector.shape_cast %51 : vector<8x8x4xf32> to vector<64x4xf32>
    %c2_80 = arith.constant 2 : index
    %c1_81 = arith.constant 1 : index
    %c0_82 = arith.constant 0 : index
    %c0_83 = arith.constant 0 : index
    %53 = vector.load %arg2[%c2_80, %c1_81, %c0_82, %c0_83] : memref<3x3x4x128xf32, #tpu.memory_space<vmem>>, vector<1x1x4x128xf32>
    %54 = vector.shape_cast %53 : vector<1x1x4x128xf32> to vector<4x128xf32>
    %cst_84 = arith.constant dense<0.000000e+00> : vector<64x128xf32>
    %55 = tpu.matmul %52, %54, %cst_84 {dimension_numbers = #tpu.dot_dimension_numbers<[1], [0], [0], [1], [0, 0, 1, 1], [], []>} : vector<64x4xf32>, vector<4x128xf32>, vector<64x128xf32> -> vector<64x128xf32>
    %56 = arith.addf %49, %55 : vector<64x128xf32>
    %c0_85 = arith.constant 0 : index
    %c0_86 = arith.constant 0 : index
    %c1_87 = arith.constant 1 : index
    %c0_88 = arith.constant 0 : index
    %c1_89 = arith.constant 1 : index
    %c0_90 = arith.constant 0 : index
    %57 = vector.load %arg1[%c0_85, %c0_86, %c1_87, %c0_88, %c1_89, %c0_90] : memref<1x2x9x2x9x4xf32, #tpu.memory_space<vmem>>, vector<1x1x8x1x8x4xf32>
    %58 = vector.shape_cast %57 : vector<1x1x8x1x8x4xf32> to vector<8x8x4xf32>
    %59 = vector.shape_cast %58 : vector<8x8x4xf32> to vector<64x4xf32>
    %c2_91 = arith.constant 2 : index
    %c2_92 = arith.constant 2 : index
    %c0_93 = arith.constant 0 : index
    %c0_94 = arith.constant 0 : index
    %60 = vector.load %arg2[%c2_91, %c2_92, %c0_93, %c0_94] : memref<3x3x4x128xf32, #tpu.memory_space<vmem>>, vector<1x1x4x128xf32>
    %61 = vector.shape_cast %60 : vector<1x1x4x128xf32> to vector<4x128xf32>
    %cst_95 = arith.constant dense<0.000000e+00> : vector<64x128xf32>
    %62 = tpu.matmul %59, %61, %cst_95 {dimension_numbers = #tpu.dot_dimension_numbers<[1], [0], [0], [1], [0, 0, 1, 1], [], []>} : vector<64x4xf32>, vector<4x128xf32>, vector<64x128xf32> -> vector<64x128xf32>
    %63 = arith.addf %56, %62 : vector<64x128xf32>
    %c0_96 = arith.constant 0 : index
    %c0_97 = arith.constant 0 : index
    %64 = vector.load %arg3[%c0_96, %c0_97] : memref<1x128xf32, #tpu.memory_space<vmem>>, vector<1x128xf32>
    %65 = vector.broadcast %64 : vector<1x128xf32> to vector<64x128xf32>
    %66 = arith.addf %63, %65 : vector<64x128xf32>
    %c0_98 = arith.constant 0 : index
    %c0_99 = arith.constant 0 : index
    %c0_100 = arith.constant 0 : index
    %67 = vector.load %arg4[%c0_98, %c0_99, %c0_100] : memref<1x64x128xf32, #tpu.memory_space<vmem>>, vector<1x64x128xf32>
    %68 = vector.shape_cast %67 : vector<1x64x128xf32> to vector<64x128xf32>
    %69 = vector.shape_cast %66 : vector<64x128xf32> to vector<1x64x128xf32>
    tpu.vector_store %arg4[%c0_98, %c0_99, %c0_100], %69 {strides = array<i32>} : memref<1x64x128xf32, #tpu.memory_space<vmem>>, vector<1x64x128xf32>,
    return
  }
  func.func @transform_0(%arg0: i32) -> (i32, i32, i32, i32, i32, i32) {
    %c0_i32 = arith.constant 0 : i32
    %c0_i32_0 = arith.constant 0 : i32
    %c0_i32_1 = arith.constant 0 : i32
    %c0_i32_2 = arith.constant 0 : i32
    %c0_i32_3 = arith.constant 0 : i32
    %c0_i32_4 = arith.constant 0 : i32
    return %arg0, %c0_i32, %c0_i32_0, %c0_i32_1, %c0_i32_2, %c0_i32_3 : i32, i32, i32, i32, i32, i32
  }
  func.func @transform_1(%arg0: i32) -> (i32, i32, i32, i32) {
    %c0_i32 = arith.constant 0 : i32
    %c0_i32_0 = arith.constant 0 : i32
    %c0_i32_1 = arith.constant 0 : i32
    %c0_i32_2 = arith.constant 0 : i32
    %c0_i32_3 = arith.constant 0 : i32
    return %c0_i32, %c0_i32_0, %c0_i32_1, %c0_i32_2 : i32, i32, i32, i32
  }
  func.func @transform_2(%arg0: i32) -> (i32, i32) {
    %c0_i32 = arith.constant 0 : i32
    %c0_i32_0 = arith.constant 0 : i32
    %c0_i32_1 = arith.constant 0 : i32
    return %c0_i32, %c0_i32_0 : i32, i32
  }
  func.func @transform_3(%arg0: i32) -> (i32, i32, i32) {
    %c0_i32 = arith.constant 0 : i32
    %c0_i32_0 = arith.constant 0 : i32
    %c0_i32_1 = arith.constant 0 : i32
    return %arg0, %c0_i32, %c0_i32_0 : i32, i32, i32
  }
}

</mosaic_0001>

<bundles_post_ra>
// kernel: _lambda_.1
= control target key start
LH: loop header
LB: loop body
LE: loop exit
PB: predicated region body
PF: predicated region fallthrough
CT: control target
= control target key end

     0   :  { %s1207_s12 = smov 0   ;;  %s1509_s0 = inlined_call_operand.vmem [shape: f32[2,2,9,2,9,4], index: 0, kind: input, shape index: {}]   ;;  %s1510_s1 = inlined_call_operand.vmem [shape: f32[3,3,4,128], index: 1, kind: input, shape index: {}]   ;;  %s1511_s2 = inlined_call_operand.vmem [shape: f32[1,128], index: 2, kind: input, shape index: {}]   ;;  %s1512_s3 = inlined_call_operand.vmem [shape: f32[2,64,128], index: 3, kind: output, shape index: {}]  }
   0x1 LB: > { %s1010_s13 = sadd.s32 4294967295, %s1185_s12   ;;  %p1014_p0 = scmp.ge.s32.totalorder %s1185_s12, 1  ;;  %s1185_s12 = sphi %s1207_s12, %s13_s12  }
   0x2   : > { %p137_p1 = scmp.lt.s32.totalorder %s1185_s12, 3 }
   0x4   : > { %p138_p2 = pnand %p1014_p0, %p137_p1 }
   0x5   : > { %p161_p3 = scmp.lt.s32.totalorder (!%p138_p2), %s1010_s13, 1 }
   0x6   : > { %141 = sbr.rel (%p138_p2) target bundleno = 295 (0x127), region = 32 }
   0xb   : > { %v1026_v0 = vld [vmem:[%s1510_s1 + $0x4] sm:$0xf]  ;;  %vm216_vm0 = vcmask 1043456   ;;  %v1045_v1 = vld [vmem:[%s1510_s1 + $0x8] sm:$0xf]  ;;  %s1514_s13 = smov (!%p161_p3, %s1010_s13), 1 }
   0xc   : > { %1166 = vmatpush.msk.msra.mxu1 %vm216_vm0, %v1026_v0  ;;  %1167 = vmatpush.msk.msra.mxu2 %vm216_vm0, %v1026_v0  ;;  %v1063_v2 = vld [vmem:[%s1510_s1 + $0xc] sm:$0xf]  ;;  %v179_v3 = vld [vmem:[%s1510_s1] sm:$0xf]  ;;  %v1081_v4 = vld [vmem:[%s1510_s1 + $0x10] sm:$0xf] }
   0xd   : > { %1168 = vmatpush.msk.msra.mxu3 %vm216_vm0, %v1026_v0  ;;  %s1169_s24 = smul.u32 576, %s1514_s13  ;;  %1027 = vmatpush.msk.msra.mxu0 %vm216_vm0, %v1026_v0  ;;  %vm191_vm1 = vcmask 31744   ;;  %v1117_v5 = vld [vmem:[%s1510_s1 + $0x18] sm:$0xf]  ;;  %v1135_v6 = vld [vmem:[%s1510_s1 + $0x1c] sm:$0xf] }
   0xe   : > { %1046 = vmatpush.msk.msrb.mxu2 %vm216_vm0, %v1045_v1  ;;  %1036 = vmatpush.msk.msrb.mxu1 %vm216_vm0, %v179_v3  ;;  %v1099_v11 = vld [vmem:[%s1510_s1 + $0x14] sm:$0xf]  ;;  %v1153_v12 = vld [vmem:[%s1510_s1 + $0x20] sm:$0xf]  ;;  %s1165_s9 = sshll.u32 %s1514_s13, 6 }
   0xf   : > { %1064 = vmatpush.msk.msrb.mxu3 %vm216_vm0, %v1063_v2  ;;  %1082 = vmatpush.msk.msrb.mxu0 %vm216_vm0, %v1081_v4  ;;  %s1244_s27 = scalar_lea.vmem %s1509_s0, %s1169_s24  ;;  %s1467_s16 = scalar_lea.vmem %s1512_s3, %s1165_s9 }
  0x10   : > { %v1253_v7 = vld [vmem:[%s1244_s27 + $0x50] sm:$0xff]  ;;  %v171_v17 = vld [vmem:[%s1244_s27] sm:$0xff] }
  0x11   : > { %v1256_v8 = vld [vmem:[%s1244_s27 + $0x90] sm:$0xff]  ;;  %1030 = vmatmul.msk.f32.vlgmr.msra.gmra.mxu1 %vm191_vm1, %v1253_v7  ;;  %v329_v18 = vld [vmem:[%s1244_s27 + $0x1] sm:$0xff] }
  0x12   : > { %v1259_v9 = vld [vmem:[%s1244_s27 + $0xd0] sm:$0xff]  ;;  %1032 = vmatmul.msk.f32.vlgmr.msra.gmra.mxu2 %vm191_vm1, %v1256_v8  ;;  %1100 = vmatpush.msk.msra.mxu1 %vm216_vm0, %v1099_v11  ;;  %v1055_v19 = vld [vmem:[%s1244_s27 + $0x120] sm:$0xff] }
  0x13   : > { %v1018_v10 = vld [vmem:[%s1244_s27 + $0x10] sm:$0xff]  ;;  %1034 = vmatmul.msk.f32.vlgmr.msra.gmra.mxu3 %vm191_vm1, %v1259_v9  ;;  %1118 = vmatpush.msk.msra.mxu2 %vm216_vm0, %v1117_v5  ;;  %v172_v21 = vld [vmem:[%s1244_s27 + $0x20] sm:$0xff] }
  0x14   : > { %1028 = vmatmul.msk.f32.vlgmr.msra.gmra.mxu0 %vm191_vm1, %v1018_v10  ;;  %1136 = vmatpush.msk.msra.mxu3 %vm216_vm0, %v1135_v6  ;;  %v1280_v13 = vld [vmem:[%s1244_s27 + $0x70] sm:$0xff]  ;;  %v330_v22 = vld [vmem:[%s1244_s27 + $0x21] sm:$0xff] }
  0x15   : > { %1154 = vmatpush.msk.msra.mxu0 %vm216_vm0, %v1153_v12  ;;  %v1283_v14 = vld [vmem:[%s1244_s27 + $0xb0] sm:$0xff]  ;;  %v1056_v23 = vld [vmem:[%s1244_s27 + $0x140] sm:$0xff] }
  0x16   : > { %v1286_v15 = vld [vmem:[%s1244_s27 + $0xf0] sm:$0xff]  ;;  %v173_v25 = vld [vmem:[%s1244_s27 + $0x40] sm:$0xff] }
  0x17   : > { %v1289_v16 = vld [vmem:[%s1244_s27 + $0x30] sm:$0xff]  ;;  %v331_v26 = vld [vmem:[%s1244_s27 + $0x41] sm:$0xff] }
  0x18   : > { %v1073_v20 = vld [vmem:[%s1244_s27 + $0x130] sm:$0xff]  ;;  %v1057_v27 = vld [vmem:[%s1244_s27 + $0x160] sm:$0xff] }
  0x19   : > { %1031 = vmatmul.msk.f32.gmra.mxu1 %vm191_vm1, %v1280_v13  ;;  %v1074_v24 = vld [vmem:[%s1244_s27 + $0x150] sm:$0xff]  ;;  %v174_v29 = vld [vmem:[%s1244_s27 + $0x60] sm:$0xff] }
  0x1a   : > { %1033 = vmatmul.msk.f32.gmra.mxu2 %vm191_vm1, %v1283_v14  ;;  %v1075_v28 = vld [vmem:[%s1244_s27 + $0x170] sm:$0xff]  ;;  %v332_v30 = vld [vmem:[%s1244_s27 + $0x61] sm:$0xff] }
  0x1b   : > { %1035 = vmatmul.msk.f32.gmra.mxu3 %vm191_vm1, %v1286_v15  ;;  %v1058_v31 = vld [vmem:[%s1244_s27 + $0x180] sm:$0xff]  ;;  %v1076_v32 = vld [vmem:[%s1244_s27 + $0x190] sm:$0xff] }
  0x1c   : > { %1029 = vmatmul.msk.f32.gmra.mxu0 %vm191_vm1, %v1289_v16  ;;  %v175_v33 = vld [vmem:[%s1244_s27 + $0x80] sm:$0xff]  ;;  %v1077_v36 = vld [vmem:[%s1244_s27 + $0x1b0] sm:$0xff] }
  0x1d   : > { %v333_v34 = vld [vmem:[%s1244_s27 + $0x81] sm:$0xff]  ;;  %v1078_v40 = vld [vmem:[%s1244_s27 + $0x1d0] sm:$0xff] }
  0x1e   : > { %v1059_v35 = vld [vmem:[%s1244_s27 + $0x1a0] sm:$0xff]  ;;  %v1079_v44 = vld [vmem:[%s1244_s27 + $0x1f0] sm:$0xff] }
  0x1f   : > { %v176_v37 = vld [vmem:[%s1244_s27 + $0xa0] sm:$0xff]  ;;  %v1080_v48 = vld [vmem:[%s1244_s27 + $0x210] sm:$0xff] }
  0x20   : > { %v334_v38 = vld [vmem:[%s1244_s27 + $0xa1] sm:$0xff]  ;;  %v1134_v63 = vld [vmem:[%s1244_s27 + $0x110] sm:$0xff] }
  0x21   : > { %1037 = vmatmul.msk.f32.vlgmr.msrb.gmra.mxu1 %vm191_vm1, %v171_v17  ;;  %v1060_v39 = vld [vmem:[%s1244_s27 + $0x1c0] sm:$0xff] }
  0x22   : > { %1047 = vmatmul.msk.f32.vlgmr.msrb.gmra.mxu2 %vm191_vm1, %v329_v18  ;;  %v177_v41 = vld [vmem:[%s1244_s27 + $0xc0] sm:$0xff] }
  0x23   : > { %1065 = vmatmul.msk.f32.vlgmr.msrb.gmra.mxu3 %vm191_vm1, %v1055_v19  ;;  %v335_v42 = vld [vmem:[%s1244_s27 + $0xc1] sm:$0xff] }
  0x24   : > { %1083 = vmatmul.msk.f32.vlgmr.msrb.gmra.mxu0 %vm191_vm1, %v1073_v20  ;;  %v1061_v43 = vld [vmem:[%s1244_s27 + $0x1e0] sm:$0xff] }
  0x25   : > { %v178_v45 = vld [vmem:[%s1244_s27 + $0xe0] sm:$0xff] }
  0x26   : > { %v336_v46 = vld [vmem:[%s1244_s27 + $0xe1] sm:$0xff] }
  0x27   : > { %v1062_v47 = vld [vmem:[%s1244_s27 + $0x200] sm:$0xff] }
  0x28   : > { %v1091_v49 = vld [vmem:[%s1244_s27 + $0x121] sm:$0xff] }
  0x29   : > { %1038 = vmatmul.msk.f32.gmra.mxu1 %vm191_vm1, %v172_v21  ;;  %v1092_v50 = vld [vmem:[%s1244_s27 + $0x141] sm:$0xff] }
  0x2a   : > { %1048 = vmatmul.msk.f32.gmra.mxu2 %vm191_vm1, %v330_v22  ;;  %v1093_v51 = vld [vmem:[%s1244_s27 + $0x161] sm:$0xff] }
  0x2b   : > { %1066 = vmatmul.msk.f32.gmra.mxu3 %vm191_vm1, %v1056_v23  ;;  %v1094_v52 = vld [vmem:[%s1244_s27 + $0x181] sm:$0xff] }
  0x2c   : > { %1084 = vmatmul.msk.f32.gmra.mxu0 %vm191_vm1, %v1074_v24  ;;  %v1095_v53 = vld [vmem:[%s1244_s27 + $0x1a1] sm:$0xff] }
  0x2d   : > { %v1096_v54 = vld [vmem:[%s1244_s27 + $0x1c1] sm:$0xff] }
  0x2e   : > { %v1097_v56 = vld [vmem:[%s1244_s27 + $0x1e1] sm:$0xff] }
  0x2f   : > { %v1098_v61 = vld [vmem:[%s1244_s27 + $0x201] sm:$0xff] }
  0x30   : > { %v1116_v62 = vld [vmem:[%s1244_s27 + $0x100] sm:$0xff] }
  0x31   : > { %1039 = vmatmul.msk.f32.gmra.mxu1 %vm191_vm1, %v173_v25  ;;  %v1152_v1 = vld [vmem:[%s1244_s27 + $0x101] sm:$0xff] }
  0x32   : > { %1049 = vmatmul.msk.f32.gmra.mxu2 %vm191_vm1, %v331_v26 }
  0x33   : > { %1067 = vmatmul.msk.f32.gmra.mxu3 %vm191_vm1, %v1057_v27 }
  0x34   : > { %1085 = vmatmul.msk.f32.gmra.mxu0 %vm191_vm1, %v1075_v28 }
  0x39   : > { %1040 = vmatmul.msk.f32.gmra.mxu1 %vm191_vm1, %v174_v29 }
  0x3a   : > { %1050 = vmatmul.msk.f32.gmra.mxu2 %vm191_vm1, %v332_v30 }
  0x3b   : > { %1068 = vmatmul.msk.f32.gmra.mxu3 %vm191_vm1, %v1058_v31 }
  0x3c   : > { %1086 = vmatmul.msk.f32.gmra.mxu0 %vm191_vm1, %v1076_v32 }
  0x41   : > { %1041 = vmatmul.msk.f32.gmra.mxu1 %vm191_vm1, %v175_v33 }
  0x42   : > { %1051 = vmatmul.msk.f32.gmra.mxu2 %vm191_vm1, %v333_v34 }
  0x43   : > { %1069 = vmatmul.msk.f32.gmra.mxu3 %vm191_vm1, %v1059_v35 }
  0x44   : > { %1087 = vmatmul.msk.f32.gmra.mxu0 %vm191_vm1, %v1077_v36 }
  0x49   : > { %1042 = vmatmul.msk.f32.gmra.mxu1 %vm191_vm1, %v176_v37 }
  0x4a   : > { %1052 = vmatmul.msk.f32.gmra.mxu2 %vm191_vm1, %v334_v38 }
  0x4b   : > { %1070 = vmatmul.msk.f32.gmra.mxu3 %vm191_vm1, %v1060_v39 }
  0x4c   : > { %1088 = vmatmul.msk.f32.gmra.mxu0 %vm191_vm1, %v1078_v40 }
  0x51   : > { %1043 = vmatmul.msk.f32.gmra.mxu1 %vm191_vm1, %v177_v41 }
  0x52   : > { %1053 = vmatmul.msk.f32.gmra.mxu2 %vm191_vm1, %v335_v42 }
  0x53   : > { %1071 = vmatmul.msk.f32.gmra.mxu3 %vm191_vm1, %v1061_v43 }
  0x54   : > { %1089 = vmatmul.msk.f32.gmra.mxu0 %vm191_vm1, %v1079_v44 }
  0x59   : > { %1044 = vmatmul.msk.f32.gmra.mxu1 %vm191_vm1, %v178_v45 }
  0x5a   : > { %1054 = vmatmul.msk.f32.gmra.mxu2 %vm191_vm1, %v336_v46 }
  0x5b   : > { %1072 = vmatmul.msk.f32.gmra.mxu3 %vm191_vm1, %v1062_v47 }
  0x5c   : > { %1090 = vmatmul.msk.f32.gmra.mxu0 %vm191_vm1, %v1080_v48 }
  0x61   : > { %1101 = vmatmul.msk.f32.vlgmr.msra.gmra.mxu1 %vm191_vm1, %v1091_v49 }
  0x62   : > { %1119 = vmatmul.msk.f32.vlgmr.msra.gmra.mxu2 %vm191_vm1, %v172_v21 }
  0x63   : > { %1137 = vmatmul.msk.f32.vlgmr.msra.gmra.mxu3 %vm191_vm1, %v1289_v16 }
  0x64   : > { %1155 = vmatmul.msk.f32.vlgmr.msra.gmra.mxu0 %vm191_vm1, %v330_v22 }
  0x69   : > { %1102 = vmatmul.msk.f32.gmra.mxu1 %vm191_vm1, %v1092_v50 }
  0x6a   : > { %1120 = vmatmul.msk.f32.gmra.mxu2 %vm191_vm1, %v173_v25 }
  0x6b   : > { %1138 = vmatmul.msk.f32.gmra.mxu3 %vm191_vm1, %v1253_v7 }
  0x6c   : > { %1156 = vmatmul.msk.f32.gmra.mxu0 %vm191_vm1, %v331_v26 }
  0x71   : > { %1103 = vmatmul.msk.f32.gmra.mxu1 %vm191_vm1, %v1093_v51 }
  0x72   : > { %1121 = vmatmul.msk.f32.gmra.mxu2 %vm191_vm1, %v174_v29 }
  0x73   : > { %1139 = vmatmul.msk.f32.gmra.mxu3 %vm191_vm1, %v1280_v13 }
  0x74   : > { %1157 = vmatmul.msk.f32.gmra.mxu0 %vm191_vm1, %v332_v30 }
  0x79   : > { %1104 = vmatmul.msk.f32.gmra.mxu1 %vm191_vm1, %v1094_v52  ;;  %v1462_v52 = vld [vmem:[%s1511_s2] ss:$0 sm:$0xff] }
  0x7a   : > { %1122 = vmatmul.msk.f32.gmra.mxu2 %vm191_vm1, %v175_v33 }
  0x7b   : > { %1140 = vmatmul.msk.f32.gmra.mxu3 %vm191_vm1, %v1256_v8 }
  0x7c   : > { %1158 = vmatmul.msk.f32.gmra.mxu0 %vm191_vm1, %v333_v34 }
  0x81   : > { %1105 = vmatmul.msk.f32.gmra.mxu1 %vm191_vm1, %v1095_v53 }
  0x82   : > { %1123 = vmatmul.msk.f32.gmra.mxu2 %vm191_vm1, %v176_v37 }
  0x83   : > { %1141 = vmatmul.msk.f32.gmra.mxu3 %vm191_vm1, %v1283_v14 }
  0x84   : > { %1159 = vmatmul.msk.f32.gmra.mxu0 %vm191_vm1, %v334_v38 }
  0x89   : > { %1106 = vmatmul.msk.f32.gmra.mxu1 %vm191_vm1, %v1096_v54 }
  0x8a   : > { %1124 = vmatmul.msk.f32.gmra.mxu2 %vm191_vm1, %v177_v41 }
  0x8b   : > { %1142 = vmatmul.msk.f32.gmra.mxu3 %vm191_vm1, %v1259_v9 }
  0x8c   : > { %1160 = vmatmul.msk.f32.gmra.mxu0 %vm191_vm1, %v335_v42 }
  0x8e   : > { %v1399_v55 = vpop.f32.mrf.mxu1 }
  0x91   : > { %v237_v57 = vpop.f32.mrf.mxu0  ;;  %1107 = vmatmul.msk.f32.gmra.mxu1 %vm191_vm1, %v1097_v56 }
  0x92   : > { %1125 = vmatmul.msk.f32.gmra.mxu2 %vm191_vm1, %v178_v45 }
  0x93   : > { %1143 = vmatmul.msk.f32.gmra.mxu3 %vm191_vm1, %v1286_v15 }
  0x94   : > { %1161 = vmatmul.msk.f32.gmra.mxu0 %vm191_vm1, %v336_v46 }
  0x95   : > { %v1407_v58 = vpop.f32.mrf.mxu2 }
  0x96   : > { %v1409_v59 = vpop.f32.mrf.mxu3  ;;  %v1411_v60 = vpop.f32.mrf.mxu1 }
  0x99   : > { %v240_v0 = vpop.f32.mrf.mxu0  ;;  %1108 = vmatmul.msk.f32.gmra.mxu1 %vm191_vm1, %v1098_v61 }
  0x9a   : > { %1126 = vmatmul.msk.f32.gmra.mxu2 %vm191_vm1, %v1116_v62 }
  0x9b   : > { %1144 = vmatmul.msk.f32.gmra.mxu3 %vm191_vm1, %v1134_v63 }
  0x9c   : > { %1162 = vmatmul.msk.f32.gmra.mxu0 %vm191_vm1, %v1152_v1 }
  0x9d   : > { %v1421_v2 = vpop.f32.mrf.mxu2 }
  0x9e   : > { %v1423_v3 = vpop.f32.mrf.mxu3  ;;  %v305_v4 = vpop.f32.mrf.mxu1 }
  0x9f   : > { %v306_v33 = vadd.f32 %v305_v4, %v237_v57 }
  0xa1   : > { %v557_v5 = vpop.f32.mrf.mxu0 }
  0xa5   : > { %v383_v6 = vpop.f32.mrf.mxu2 }
  0xa6   : > { %v470_v7 = vpop.f32.mrf.mxu3  ;;  %v308_v8 = vpop.f32.mrf.mxu1  ;;  %v407_v35 = vadd.f32 %v383_v6, %v306_v33 }
  0xa7   : > { %v309_v40 = vadd.f32 %v308_v8, %v240_v0 }
  0xa8   : > { %v494_v37 = vadd.f32 %v470_v7, %v407_v35 }
  0xa9   : > { %v560_v9 = vpop.f32.mrf.mxu0 }
  0xaa   : > { %v581_v42 = vadd.f32 %v557_v5, %v494_v37 }
  0xad   : > { %v386_v10 = vpop.f32.mrf.mxu2 }
  0xae   : > { %v473_v11 = vpop.f32.mrf.mxu3  ;;  %v311_v12 = vpop.f32.mrf.mxu1  ;;  %v408_v43 = vadd.f32 %v386_v10, %v309_v40 }
  0xaf   : > { %v312_v50 = vadd.f32 %v311_v12, %v1399_v55 }
  0xb0   : > { %v495_v46 = vadd.f32 %v473_v11, %v408_v43 }
  0xb1   : > { %v563_v13 = vpop.f32.mrf.mxu0 }
  0xb2   : > { %v582_v54 = vadd.f32 %v560_v9, %v495_v46 }
  0xb5   : > { %v389_v14 = vpop.f32.mrf.mxu2 }
  0xb6   : > { %v476_v15 = vpop.f32.mrf.mxu3  ;;  %v314_v16 = vpop.f32.mrf.mxu1  ;;  %v409_v56 = vadd.f32 %v389_v14, %v312_v50 }
  0xb7   : > { %v315_v5 = vadd.f32 %v314_v16, %v1411_v60 }
  0xb8   : > { %v496_v63 = vadd.f32 %v476_v15, %v409_v56 }
  0xb9   : > { %v1425_v17 = vpop.f32.mrf.mxu0 }
  0xba   : > { %v583_v8 = vadd.f32 %v563_v13, %v496_v63 }
  0xbd   : > { %v392_v18 = vpop.f32.mrf.mxu2 }
  0xbe   : > { %v479_v19 = vpop.f32.mrf.mxu3  ;;  %v317_v20 = vpop.f32.mrf.mxu1  ;;  %v410_v9 = vadd.f32 %v392_v18, %v315_v5 }
  0xc0   : > { %v497_v33 = vadd.f32 %v479_v19, %v410_v9 }
  0xc1   : > { %v1427_v21 = vpop.f32.mrf.mxu0 }
  0xc2   : > { %v584_v60 = vadd.f32 %v1425_v17, %v497_v33 }
  0xc5   : > { %v1429_v22 = vpop.f32.mrf.mxu2 }
  0xc6   : > { %v1431_v23 = vpop.f32.mrf.mxu3  ;;  %v1433_v24 = vpop.f32.mrf.mxu1 }
  0xc9   : > { %v1435_v25 = vpop.f32.mrf.mxu0 }
  0xcd   : > { %v1437_v26 = vpop.f32.mrf.mxu2 }
  0xce   : > { %v1439_v27 = vpop.f32.mrf.mxu3  ;;  %v1441_v28 = vpop.f32.mrf.mxu1 }
  0xd1   : > { %v1443_v29 = vpop.f32.mrf.mxu0 }
  0xd5   : > { %v1445_v30 = vpop.f32.mrf.mxu2 }
  0xd6   : > { %v1447_v31 = vpop.f32.mrf.mxu3  ;;  %v1449_v32 = vpop.f32.mrf.mxu1 }
  0xd9   : > { %v1451_v34 = vpop.f32.mrf.mxu0 }
  0xdd   : > { %v1453_v36 = vpop.f32.mrf.mxu2 }
  0xde   : > { %v1455_v38 = vpop.f32.mrf.mxu3  ;;  %v643_v39 = vpop.f32.mrf.mxu1 }
  0xdf   : > { %v667_v44 = vadd.f32 %v643_v39, %v581_v42  ;;  %v318_v39 = vadd.f32 %v317_v20, %v1407_v58  ;;  %v321_v58 = vadd.f32 %v1433_v24, %v1421_v2  ;;  %v324_v2 = vadd.f32 %v1441_v28, %v1409_v59 }
  0xe0   : > { %v327_v59 = vadd.f32 %v1449_v32, %v1423_v3 }
  0xe1   : > { %v903_v41 = vpop.f32.mrf.mxu0  ;;  %v411_v13 = vadd.f32 %v1429_v22, %v318_v39  ;;  %v412_v22 = vadd.f32 %v1437_v26, %v321_v58  ;;  %v413_v26 = vadd.f32 %v1445_v30, %v324_v2 }
  0xe2   : > { %v414_v30 = vadd.f32 %v1453_v36, %v327_v59 }
  0xe3   : > { %v498_v19 = vadd.f32 %v1431_v23, %v411_v13  ;;  %v499_v23 = vadd.f32 %v1439_v27, %v412_v22  ;;  %v500_v27 = vadd.f32 %v1447_v31, %v413_v26 }
  0xe4   : > { %v501_v31 = vadd.f32 %v1455_v38, %v414_v30 }
  0xe5   : > { %v730_v45 = vpop.f32.mrf.mxu2  ;;  %v585_v17 = vadd.f32 %v1427_v21, %v498_v19  ;;  %v586_v21 = vadd.f32 %v1435_v25, %v499_v23  ;;  %v587_v25 = vadd.f32 %v1443_v29, %v500_v27 }
  0xe6   : > { %v754_v47 = vadd.f32 %v730_v45, %v667_v44  ;;  %v817_v48 = vpop.f32.mrf.mxu3  ;;  %v646_v49 = vpop.f32.mrf.mxu1  ;;  %v588_v32 = vadd.f32 %v1451_v34, %v501_v31 }
  0xe7   : > { %v668_v61 = vadd.f32 %v646_v49, %v582_v54 }
  0xe8   : > { %v841_v51 = vadd.f32 %v817_v48, %v754_v47 }
  0xe9   : > { %v906_v53 = vpop.f32.mrf.mxu0 }
  0xea   : > { %v927_v57 = vadd.f32 %v903_v41, %v841_v51 }
  0xec   : > { %v939_v55 = vadd.f32 %v1462_v52, %v927_v57 }
  0xed   : > { %v733_v62 = vpop.f32.mrf.mxu2 }
  0xee   : > { %947 = vst [vmem:[%s1467_s16] sm:$0xff] %v939_v55  ;;  %v755_v0 = vadd.f32 %v733_v62, %v668_v61  ;;  %v820_v1 = vpop.f32.mrf.mxu3  ;;  %v649_v4 = vpop.f32.mrf.mxu1 }
  0xef   : > { %v669_v11 = vadd.f32 %v649_v4, %v583_v8 }
  0xf0   : > { %v842_v6 = vadd.f32 %v820_v1, %v755_v0 }
  0xf1   : > { %v909_v7 = vpop.f32.mrf.mxu0 }
  0xf2   : > { %v928_v10 = vadd.f32 %v906_v53, %v842_v6 }
  0xf4   : > { %v940_v12 = vadd.f32 %v1462_v52, %v928_v10 }
  0xf5   : > { %v736_v14 = vpop.f32.mrf.mxu2 }
  0xf6   : > { %948 = vst [vmem:[%s1467_s16 + $0x8] sm:$0xff] %v940_v12  ;;  %v756_v35 = vadd.f32 %v736_v14, %v669_v11  ;;  %v823_v15 = vpop.f32.mrf.mxu3  ;;  %v652_v37 = vpop.f32.mrf.mxu1 }
  0xf7   : > { %v670_v18 = vadd.f32 %v652_v37, %v584_v60 }
  0xf8   : > { %v843_v40 = vadd.f32 %v823_v15, %v756_v35 }
  0xf9   : > { %v912_v41 = vpop.f32.mrf.mxu0 }
  0xfa   : > { %v929_v16 = vadd.f32 %v909_v7, %v843_v40 }
  0xfc   : > { %v941_v42 = vadd.f32 %v1462_v52, %v929_v16 }
  0xfd   : > { %v739_v43 = vpop.f32.mrf.mxu2 }
  0xfe   : > { %949 = vst [vmem:[%s1467_s16 + $0x10] sm:$0xff] %v941_v42  ;;  %v757_v44 = vadd.f32 %v739_v43, %v670_v18  ;;  %v826_v45 = vpop.f32.mrf.mxu3  ;;  %v655_v46 = vpop.f32.mrf.mxu1 }
  0xff   : > { %v671_v49 = vadd.f32 %v655_v46, %v585_v17 }
 0x100   : > { %v844_v20 = vadd.f32 %v826_v45, %v757_v44 }
 0x101   : > { %v915_v47 = vpop.f32.mrf.mxu0 }
 0x102   : > { %v930_v48 = vadd.f32 %v912_v41, %v844_v20 }
 0x104   : > { %v942_v50 = vadd.f32 %v1462_v52, %v930_v48 }
 0x105   : > { %v742_v51 = vpop.f32.mrf.mxu2 }
 0x106   : > { %950 = vst [vmem:[%s1467_s16 + $0x18] sm:$0xff] %v942_v50  ;;  %v758_v53 = vadd.f32 %v742_v51, %v671_v49  ;;  %v829_v54 = vpop.f32.mrf.mxu3  ;;  %v658_v56 = vpop.f32.mrf.mxu1 }
 0x107   : > { %v672_v55 = vadd.f32 %v658_v56, %v586_v21 }
 0x108   : > { %v845_v24 = vadd.f32 %v829_v54, %v758_v53 }
 0x109   : > { %v918_v61 = vpop.f32.mrf.mxu0 }
 0x10a   : > { %v931_v57 = vadd.f32 %v915_v47, %v845_v24 }
 0x10c   : > { %v943_v62 = vadd.f32 %v1462_v52, %v931_v57 }
 0x10d   : > { %v745_v63 = vpop.f32.mrf.mxu2 }
 0x10e   : > { %951 = vst [vmem:[%s1467_s16 + $0x20] sm:$0xff] %v943_v62  ;;  %v759_v0 = vadd.f32 %v745_v63, %v672_v55  ;;  %v832_v1 = vpop.f32.mrf.mxu3  ;;  %v661_v4 = vpop.f32.mrf.mxu1 }
 0x10f   : > { %v673_v6 = vadd.f32 %v661_v4, %v587_v25 }
 0x110   : > { %v846_v28 = vadd.f32 %v832_v1, %v759_v0 }
 0x111   : > { %v921_v9 = vpop.f32.mrf.mxu0 }
 0x112   : > { %v932_v5 = vadd.f32 %v918_v61, %v846_v28 }
 0x114   : > { %v944_v7 = vadd.f32 %v1462_v52, %v932_v5 }
 0x115   : > { %v748_v8 = vpop.f32.mrf.mxu2 }
 0x116   : > { %952 = vst [vmem:[%s1467_s16 + $0x28] sm:$0xff] %v944_v7  ;;  %v760_v10 = vadd.f32 %v748_v8, %v673_v6  ;;  %v835_v11 = vpop.f32.mrf.mxu3  ;;  %v664_v3 = vpop.f32.mrf.mxu1 }
 0x117   : > { %v674_v14 = vadd.f32 %v664_v3, %v588_v32 }
 0x118   : > { %v847_v12 = vadd.f32 %v835_v11, %v760_v10 }
 0x119   : > { %v924_v37 = vpop.f32.mrf.mxu0 }
 0x11a   : > { %v933_v29 = vadd.f32 %v921_v9, %v847_v12 }
 0x11c   : > { %v945_v36 = vadd.f32 %v1462_v52, %v933_v29 }
 0x11d   : > { %v751_v33 = vpop.f32.mrf.mxu2 }
 0x11e   : > { %953 = vst [vmem:[%s1467_s16 + $0x30] sm:$0xff] %v945_v36  ;;  %v761_v35 = vadd.f32 %v751_v33, %v674_v14  ;;  %v838_v15 = vpop.f32.mrf.mxu3 }
 0x120   : > { %v848_v39 = vadd.f32 %v838_v15, %v761_v35 }
 0x122   : > { %v934_v40 = vadd.f32 %v924_v37, %v848_v39 }
 0x124   : > { %v946_v38 = vadd.f32 %v1462_v52, %v934_v40 }
 0x126   : > { %954 = vst [vmem:[%s1467_s16 + $0x38] sm:$0xff] %v946_v38 }
 0x127 PF: > { %s13_s12 = sadd.s32 1, %s1185_s12  }
 0x128   : > { %p10_p4 = scmp.ge.s32.totalorder %s13_s12, 4  }
 0x12a   :  { %12 = sbr.rel (!%p10_p4) target bundleno = 1 (0x1), region = 75 }

</bundles_post_ra>
